<compile_context>
chip_gen: v7x
topology: tpu7x:2x2x1
jax: 0.10.0
libtpu: 0.0.40
codegen_flags: <defaults>
</compile_context>

<pallas_src>
import functools

import jax
import jax.numpy as jnp
from jax import lax
from jax.experimental import pallas as pl
from jax.experimental.pallas import tpu as pltpu


def _dice_partial_kernel(preds_ref, targets_ref, inter_ref, union_ref, *,
                         n_cols, nk_per, block_n, need_mask):
    """Accumulates per-row intersection / union partial sums for one (p, i) block."""
    k = pl.program_id(2)

    @pl.when(k == 0)
    def _init():
        inter_ref[...] = jnp.zeros_like(inter_ref)
        union_ref[...] = jnp.zeros_like(union_ref)

    # Class-membership masks in the input's native (possibly int8) dtype.
    p1 = preds_ref[...] == 1            # (TB, TN) bool
    t1 = targets_ref[...] == 1

    if need_mask:
        # Logical tile index along N for this (parallel-half, k) step; lanes
        # whose global column index is >= N contribute nothing (same effect
        # as the old pad-with-0 trick, without the HBM pad copy).
        g = pl.program_id(0) * nk_per + k
        col = g * block_n + lax.broadcasted_iota(jnp.int32, p1.shape, 1)
        valid = col < n_cols
        p1 = jnp.logical_and(p1, valid)
        t1 = jnp.logical_and(t1, valid)

    # Single lane-reduction per quantity; union == sum(p) + sum(t) == sum(p + t).
    inter_rows = jnp.sum(jnp.logical_and(p1, t1).astype(jnp.float32),
                         axis=1, keepdims=True)                       # (TB, 1)
    union_rows = jnp.sum(p1.astype(jnp.float32) + t1.astype(jnp.float32),
                         axis=1, keepdims=True)                       # (TB, 1)

    # Output blocks are resident across the k (reduction) axis -> accumulate
    # directly; HBM writeback happens once per (p, i) block.
    inter_ref[...] += inter_rows[None]
    union_ref[...] += union_rows[None]


def _sublane_pack(dtype):
    """Packed sublane count of the (sublane, 128) VMEM tile for this dtype."""
    return {4: 8, 2: 16, 1: 32}.get(jnp.dtype(dtype).itemsize, 8)


def dice_acc(preds, targets, smooth=1e-06, *, tile_byte_budget=None):
    """Dice score per batch row.  preds/targets: (B, N) integer class-id maps.

    Inputs may be int8/uint8/int16/int32 (kept in native dtype -> minimal HBM
    traffic); the `== 1` compare happens in-kernel.
    """
    assert preds.shape == targets.shape and preds.ndim == 2
    B, N = preds.shape

    sub = max(_sublane_pack(preds.dtype), _sublane_pack(targets.dtype))
    itemsize = max(jnp.dtype(preds.dtype).itemsize,
                   jnp.dtype(targets.dtype).itemsize)

    # ---- Row block: dtype-aware pack, cdiv grid; ragged last block's garbage
    # rows are discarded by the wrapper slice below.
    if B <= sub:
        TB, nb = B, 1            # block second-minor == full dim: always legal
    else:
        TB, nb = sub, pl.cdiv(B, sub)
    padded_rows = TB if TB % sub == 0 else sub   # VMEM sublane padding of a block

    # ---- Column block: generation-aware per-input-buffer byte budget.
    if tile_byte_budget is None:
        try:
            vmem_cap = int(pltpu.get_tpu_info().vmem_capacity_bytes)
        except Exception:
            vmem_cap = 64 * 1024 * 1024          # conservative (v7x per-core VMEM)
        # ~4 MiB/buffer on v6e/v7x (2 inputs x 2 buffers = 16 MiB footprint),
        # never more than 1/16 of physical VMEM.
        tile_byte_budget = max(512 * 1024, min(4 * 1024 * 1024, vmem_cap // 16))

    elems_budget = max(128, tile_byte_budget // (padded_rows * itemsize))
    if N <= elems_budget:
        TN, nk_total = N, 1                       # whole row in one tile (full dim)
    else:
        TN = (elems_budget // 128) * 128          # largest 128-multiple in budget
        nk_total = pl.cdiv(N, TN)

    # ---- v7x megacore: if the batch axis has a single block, split the
    # reduction axis into two "parallel" halves so both TensorCores get work.
    P = 1
    if nb == 1 and nk_total >= 2:
        P = 2
        if nk_total % 2 == 1:
            # Prefer an even tile count so the halves cover N exactly (no
            # redundant clamped tile); fall back to <=1 wasted tile otherwise.
            tn_even = ((pl.cdiv(N, nk_total + 1) + 127) // 128) * 128
            if tn_even >= 128:
                nk_even = pl.cdiv(N, tn_even)
                if nk_even % 2 == 0 and nk_even >= 2:
                    TN, nk_total = tn_even, nk_even
    nk_per = pl.cdiv(nk_total, P)

    need_mask = (P * nk_per * TN) != N
    grid = (P, nb, nk_per)
    RB = nb * TB

    def in_index_map(p, i, k):
        # Clamp so a (rare) fully-out-of-range logical tile DMAs in-bounds
        # data; its contribution is zeroed by the in-kernel column mask.
        g = jnp.minimum(p * nk_per + k, nk_total - 1)
        return (i, g)

    out_spec = pl.BlockSpec((1, TB, 1), lambda p, i, k: (p, i, 0))

    lane_pad = ((TN + 127) // 128) * 128
    block_bytes = padded_rows * lane_pad * itemsize
    footprint = 2 * 2 * block_bytes              # 2 inputs x double-buffered
    vmem_limit_bytes = int(max(32 * 1024 * 1024, footprint + (4 << 20)))

    cost = pl.CostEstimate(
        flops=6 * B * N,
        transcendentals=0,
        bytes_accessed=B * N * (jnp.dtype(preds.dtype).itemsize
                                + jnp.dtype(targets.dtype).itemsize)
                       + 2 * P * RB * 4,
    )

    kernel = functools.partial(_dice_partial_kernel, n_cols=N, nk_per=nk_per,
                               block_n=TN, need_mask=need_mask)

    inter_out, union_out = pl.pallas_call(
        kernel,
        out_shape=(jax.ShapeDtypeStruct((P, RB, 1), jnp.float32),
                   jax.ShapeDtypeStruct((P, RB, 1), jnp.float32)),
        grid=grid,
        in_specs=[
            pl.BlockSpec((TB, TN), in_index_map),
            pl.BlockSpec((TB, TN), in_index_map),
        ],
        out_specs=(out_spec, out_spec),
        compiler_params=pltpu.CompilerParams(
            # parallel-half and batch axes parallel (v7x megacore), reduction
            # axis sequential.
            dimension_semantics=("parallel", "parallel", "arbitrary"),
            vmem_limit_bytes=vmem_limit_bytes,
        ),
        cost_estimate=cost,
    )(preds, targets)

    # Tiny epilogue on (P, B) partials: fold the parallel halves, drop the
    # padded garbage rows, apply smooth + divide.
    inter = jnp.sum(inter_out[:, :B, 0], axis=0)
    union = jnp.sum(union_out[:, :B, 0], axis=0)
    return (2.0 * inter + smooth) / (union + smooth)


def dice_acc_ref(preds, targets, smooth=1e-06):
    p = (preds == 1).astype(jnp.float32)
    t = (targets == 1).astype(jnp.float32)
    inter = jnp.sum(p * t, axis=1)
    union = jnp.sum(p, axis=1) + jnp.sum(t, axis=1)
    return (2.0 * inter + smooth) / (union + smooth)


if __name__ == "__main__":
    key = jax.random.PRNGKey(0)
    k1p, k1t, k2p, k2t, k3p, k3t = jax.random.split(key, 6)

    # Primary case: batch=2, flattened 16x16 spatial map of integer class ids.
    B, N = 2, 256
    preds = jax.random.randint(k1p, (B, N), 0, 3, dtype=jnp.int32)
    targets = jax.random.randint(k1t, (B, N), 0, 3, dtype=jnp.int32)
    out = jax.block_until_ready(dice_acc(preds, targets))
    ref = dice_acc_ref(preds, targets)
    assert out.shape == (B,)
    assert jnp.allclose(out, ref, atol=1e-5, rtol=1e-5), (out, ref)

    # int8 class maps + non-128-aligned N: exercises the multi-tile reduction,
    # the in-kernel ragged-lane mask, and the 2-way parallel reduction split
    # (a tiny tile budget forces several column tiles at this small size).
    B2, N2 = 3, 5000
    p8 = jax.random.randint(k2p, (B2, N2), 0, 3).astype(jnp.int8)
    t8 = jax.random.randint(k2t, (B2, N2), 0, 3).astype(jnp.int8)
    out2 = jax.block_until_ready(dice_acc(p8, t8, tile_byte_budget=64 * 1024))
    ref2 = dice_acc_ref(p8, t8)
    assert jnp.allclose(out2, ref2, atol=1e-5, rtol=1e-5), (out2, ref2)

    # Batch not divisible by the row pack: ragged last row block, rows sliced off.
    B3, N3 = 11, 640
    p3 = jax.random.randint(k3p, (B3, N3), 0, 3, dtype=jnp.int32)
    t3 = jax.random.randint(k3t, (B3, N3), 0, 3, dtype=jnp.int32)
    out3 = jax.block_until_ready(dice_acc(p3, t3))
    ref3 = dice_acc_ref(p3, t3)
    assert out3.shape == (B3,)
    assert jnp.allclose(out3, ref3, atol=1e-5, rtol=1e-5), (out3, ref3)

    print("KERNEL_OK")
</pallas_src>

<mosaic_0001>
module attributes {stable_mosaic.version = 11 : i64} {
  func.func @_dice_partial_kernel(%arg0: i32, %arg1: i32, %arg2: i32, %arg3: memref<2x256xi32, #tpu.memory_space<vmem>>, %arg4: memref<2x256xi32, #tpu.memory_space<vmem>>, %arg5: memref<1x2x1xf32, #tpu.memory_space<vmem>>, %arg6: memref<1x2x1xf32, #tpu.memory_space<vmem>>) attributes {dimension_semantics = [#tpu.dimension_semantics<parallel>, #tpu.dimension_semantics<parallel>, #tpu.dimension_semantics<arbitrary>], iteration_bounds = array<i64: 1, 1, 1>, scalar_prefetch = 0 : i64, scratch_operands = 0 : i64, tpu.core_type = #tpu.core_type<tc>, window_params = [{transform_indices = @transform_0, window_bounds = array<i64: 2, 256>}, {transform_indices = @transform_1, window_bounds = array<i64: 2, 256>}, {transform_indices = @transform_2, window_bounds = array<i64: 1, 2, 1>}, {transform_indices = @transform_3, window_bounds = array<i64: 1, 2, 1>}]} {
    %c0_i32 = arith.constant 0 : i32
    %0 = arith.cmpi eq, %arg2, %c0_i32 : i32
    %1 = arith.extui %0 : i1 to i32
    %c0_i32_0 = arith.constant 0 : i32
    %2 = arith.cmpi ne, %1, %c0_i32_0 : i32
    scf.if %2 {
      %cst_18 = arith.constant 0.000000e+00 : f32
      %29 = vector.broadcast %cst_18 : f32 to vector<1x2x1xf32>
      %c0_19 = arith.constant 0 : index
      %c0_20 = arith.constant 0 : index
      %c0_21 = arith.constant 0 : index
      %30 = vector.load %arg5[%c0_19, %c0_20, %c0_21] : memref<1x2x1xf32, #tpu.memory_space<vmem>>, vector<1x2x1xf32>
      tpu.vector_store %arg5[%c0_19, %c0_20, %c0_21], %29 {strides = array<i32>} : memref<1x2x1xf32, #tpu.memory_space<vmem>>, vector<1x2x1xf32>,
      %cst_22 = arith.constant 0.000000e+00 : f32
      %31 = vector.broadcast %cst_22 : f32 to vector<1x2x1xf32>
      %c0_23 = arith.constant 0 : index
      %c0_24 = arith.constant 0 : index
      %c0_25 = arith.constant 0 : index
      %32 = vector.load %arg6[%c0_23, %c0_24, %c0_25] : memref<1x2x1xf32, #tpu.memory_space<vmem>>, vector<1x2x1xf32>
      tpu.vector_store %arg6[%c0_23, %c0_24, %c0_25], %31 {strides = array<i32>} : memref<1x2x1xf32, #tpu.memory_space<vmem>>, vector<1x2x1xf32>,
    } else {
    }
    %c0 = arith.constant 0 : index
    %c0_1 = arith.constant 0 : index
    %3 = vector.load %arg3[%c0, %c0_1] : memref<2x256xi32, #tpu.memory_space<vmem>>, vector<2x256xi32>
    %c1_i32 = arith.constant 1 : i32
    %4 = vector.broadcast %c1_i32 : i32 to vector<2x256xi32>
    %5 = arith.cmpi eq, %3, %4 : vector<2x256xi32>
    %c0_2 = arith.constant 0 : index
    %c0_3 = arith.constant 0 : index
    %6 = vector.load %arg4[%c0_2, %c0_3] : memref<2x256xi32, #tpu.memory_space<vmem>>, vector<2x256xi32>
    %c1_i32_4 = arith.constant 1 : i32
    %7 = vector.broadcast %c1_i32_4 : i32 to vector<2x256xi32>
    %8 = arith.cmpi eq, %6, %7 : vector<2x256xi32>
    %9 = arith.andi %5, %8 : vector<2x256xi1>
    %10 = arith.extui %9 : vector<2x256xi1> to vector<2x256xi32>
    %11 = arith.sitofp %10 : vector<2x256xi32> to vector<2x256xf32>
    %cst = arith.constant dense<0.000000e+00> : vector<2xf32>
    %12 = vector.multi_reduction <add>, %11, %cst [1] : vector<2x256xf32> to vector<2xf32>
    %13 = vector.shape_cast %12 : vector<2xf32> to vector<2x1xf32>
    %14 = arith.extui %5 : vector<2x256xi1> to vector<2x256xi32>
    %15 = arith.sitofp %14 : vector<2x256xi32> to vector<2x256xf32>
    %16 = arith.extui %8 : vector<2x256xi1> to vector<2x256xi32>
    %17 = arith.sitofp %16 : vector<2x256xi32> to vector<2x256xf32>
    %18 = arith.addf %15, %17 : vector<2x256xf32>
    %cst_5 = arith.constant dense<0.000000e+00> : vector<2xf32>
    %19 = vector.multi_reduction <add>, %18, %cst_5 [1] : vector<2x256xf32> to vector<2xf32>
    %20 = vector.shape_cast %19 : vector<2xf32> to vector<2x1xf32>
    %c0_6 = arith.constant 0 : index
    %c0_7 = arith.constant 0 : index
    %c0_8 = arith.constant 0 : index
    %21 = vector.load %arg5[%c0_6, %c0_7, %c0_8] : memref<1x2x1xf32, #tpu.memory_space<vmem>>, vector<1x2x1xf32>
    %22 = vector.shape_cast %13 : vector<2x1xf32> to vector<1x2x1xf32>
    %23 = arith.addf %21, %22 : vector<1x2x1xf32>
    %c0_9 = arith.constant 0 : index
    %c0_10 = arith.constant 0 : index
    %c0_11 = arith.constant 0 : index
    %24 = vector.load %arg5[%c0_9, %c0_10, %c0_11] : memref<1x2x1xf32, #tpu.memory_space<vmem>>, vector<1x2x1xf32>
    tpu.vector_store %arg5[%c0_9, %c0_10, %c0_11], %23 {strides = array<i32>} : memref<1x2x1xf32, #tpu.memory_space<vmem>>, vector<1x2x1xf32>,
    %c0_12 = arith.constant 0 : index
    %c0_13 = arith.constant 0 : index
    %c0_14 = arith.constant 0 : index
    %25 = vector.load %arg6[%c0_12, %c0_13, %c0_14] : memref<1x2x1xf32, #tpu.memory_space<vmem>>, vector<1x2x1xf32>
    %26 = vector.shape_cast %20 : vector<2x1xf32> to vector<1x2x1xf32>
    %27 = arith.addf %25, %26 : vector<1x2x1xf32>
    %c0_15 = arith.constant 0 : index
    %c0_16 = arith.constant 0 : index
    %c0_17 = arith.constant 0 : index
    %28 = vector.load %arg6[%c0_15, %c0_16, %c0_17] : memref<1x2x1xf32, #tpu.memory_space<vmem>>, vector<1x2x1xf32>
    tpu.vector_store %arg6[%c0_15, %c0_16, %c0_17], %27 {strides = array<i32>} : memref<1x2x1xf32, #tpu.memory_space<vmem>>, vector<1x2x1xf32>,
    return
  }
  func.func @transform_0(%arg0: i32, %arg1: i32, %arg2: i32) -> (i32, i32) {
    %c1_i32 = arith.constant 1 : i32
    %0 = arith.muli %arg0, %c1_i32 : i32
    %1 = arith.addi %0, %arg2 : i32
    %c0_i32 = arith.constant 0 : i32
    %2 = arith.minsi %1, %c0_i32 : i32
    %c0_i32_0 = arith.constant 0 : i32
    return %arg1, %2 : i32, i32
  }
  func.func @transform_1(%arg0: i32, %arg1: i32, %arg2: i32) -> (i32, i32) {
    %c1_i32 = arith.constant 1 : i32
    %0 = arith.muli %arg0, %c1_i32 : i32
    %1 = arith.addi %0, %arg2 : i32
    %c0_i32 = arith.constant 0 : i32
    %2 = arith.minsi %1, %c0_i32 : i32
    %c0_i32_0 = arith.constant 0 : i32
    return %arg1, %2 : i32, i32
  }
  func.func @transform_2(%arg0: i32, %arg1: i32, %arg2: i32) -> (i32, i32, i32) {
    %c0_i32 = arith.constant 0 : i32
    %c0_i32_0 = arith.constant 0 : i32
    return %arg0, %arg1, %c0_i32 : i32, i32, i32
  }
  func.func @transform_3(%arg0: i32, %arg1: i32, %arg2: i32) -> (i32, i32, i32) {
    %c0_i32 = arith.constant 0 : i32
    %c0_i32_0 = arith.constant 0 : i32
    return %arg0, %arg1, %c0_i32 : i32, i32, i32
  }
}

</mosaic_0001>

<bundles_post_ra>
// kernel: tpu_custom_call.1
= control target key start
LH: loop header
LB: loop body
LE: loop exit
PB: predicated region body
PF: predicated region fallthrough
CT: control target
= control target key end

     0   :  { %9 = vsyncpa [#allocation3], 0  ;;  %s255_s0 = inlined_call_operand.hbm [shape: s32[2,256], index: 0, kind: input, shape index: {}]   ;;  %s256_s1 = inlined_call_operand.hbm [shape: s32[2,256], index: 1, kind: input, shape index: {}]   ;;  %s257_s2 = inlined_call_operand.vmem [shape: f32[1,2,1], index: 2, kind: output, shape index: {0}]   ;;  %s258_s3 = inlined_call_operand.vmem [shape: f32[1,2,1], index: 3, kind: output, shape index: {1}]  }
   0x1   :  { %10 = vsyncpa [#allocation5], 0  ;;  %s185_s12 = smov [#allocation2]   ;;  %s186_s14 = smov [#allocation4]  }
   0x2   :  { %s23_s13 = sshll.u32 %s185_s12, 4  ;;  %s39_s15 = sshll.u32 %s186_s14, 4  ;;  %s24_s13 = int_to_ptr.vmem [resolvable:$true] %s23_s13  ;;  %s40_s15 = int_to_ptr.vmem [resolvable:$true] %s39_s15 }
   0x3   :  { %s137_s18 = scalar_lea.hbm %s255_s0, 64 }
   0x4   :  { %p138_p0 = scmp.ne.s32.totalorder %s255_s0, %s137_s18  ;;  %p141_p1 = scmp.lt.u32.totalorder %s137_s18, %s255_s0 }
   0x6   :  { %p143_p2 = pnand %p141_p1, %p138_p0 }
   0x8   :  { %146 = shalt.err (!%p143_p2)
}
   0x9   :  { %s147_s23 = scalar_lea.vmem %s24_s13, 64  ;;  %p152_p4 = scmp.lt.s32.totalorder %s24_s13, %s24_s13 }
   0xa   :  { %p148_p3 = scmp.ne.s32.totalorder %s24_s13, %s147_s23  ;;  %p153_p5 = scmp.lt.s32.totalorder %s147_s23, %s147_s23 }
   0xc   :  { %p154_p6 = por %p153_p5, %p152_p4 }
   0xe   :  { %p155_p7 = pnand %p154_p6, %p148_p3 }
  0x10   :  { %158 = shalt.err (!%p155_p7)
}
  0x11   :  { %26 = dma.hbm_to_vmem [thread:$0]  %s255_s0, 64, %s24_s13, [#allocation3]  }
  0x12   :  { %s159_s28 = scalar_lea.hbm %s256_s1, 64 }
  0x13   :  { %p160_p8 = scmp.ne.s32.totalorder %s256_s1, %s159_s28  ;;  %p163_p9 = scmp.lt.u32.totalorder %s159_s28, %s256_s1 }
  0x15   :  { %p165_p10 = pnand %p163_p9, %p160_p8 }
  0x17   :  { %168 = shalt.err (!%p165_p10)
}
  0x18   :  { %s169_s6 = scalar_lea.vmem %s40_s15, 64  ;;  %p174_p12 = scmp.lt.s32.totalorder %s40_s15, %s40_s15 }
  0x19   :  { %p170_p11 = scmp.ne.s32.totalorder %s40_s15, %s169_s6  ;;  %p175_p13 = scmp.lt.s32.totalorder %s169_s6, %s169_s6 }
  0x1b   :  { %p176_p0 = por %p175_p13, %p174_p12 }
  0x1d   :  { %p177_p1 = pnand %p176_p0, %p170_p11 }
  0x1f   :  { %180 = shalt.err (!%p177_p1)
}
  0x20   :  { %42 = dma.hbm_to_vmem [thread:$0]  %s256_s1, 64, %s40_s15, [#allocation5]  }
  0x21   :  { %181 = dma.done.wait [#allocation3], 64  }
  0x22   :  { %182 = vsyncadd [#allocation3], 4294967232 }
  0x23   :  { %183 = dma.done.wait [#allocation5], 64  }
  0x24   :  { %184 = vsyncadd [#allocation5], 4294967232  ;;  %v75_v0 = vlaneseq  ;;  %v187_v1 = vmov 1983009808   ;;  %vm61_vm0 = vcmask 1024   ;;  %v188_v3 = vmov 0.0  }
  0x25   :  { %v73_v2 = vunpack.c.l.s4 %v187_v1  ;;  %62 = vst.msk [vmem:[%s257_s2] sm:$0x3] %vm61_vm0, %v188_v3  ;;  %63 = vst.msk [vmem:[%s258_s3] sm:$0x3] %vm61_vm0, %v188_v3  ;;  %v64_v6 = vld [vmem:[#allocation2] sm:$0xf] }
  0x26   :  { %v76_v5 = vshrl.u32 %v75_v0, 7  ;;  %v66_v7 = vld [vmem:[#allocation4] sm:$0xf]  ;;  %vm65_vm1 = vcmp.eq.s32.totalorder %v64_v6, 1  ;;  %vm82_vm4 = vcmask 1041408  }
  0x27   :  { %v74_v4 = vunpack.c.0.s8 %v73_v2  ;;  %vm67_vm2 = vcmp.eq.s32.totalorder %v66_v7, 1  ;;  %v131_v9 = vsel %vm65_vm1, 1.0, %v188_v3 }
  0x28   :  { %vm68_vm3 = vmand %vm65_vm1, %vm67_vm2  ;;  %v132_v10 = vsel %vm67_vm2, 1.0, %v188_v3 }
  0x29   :  { %v77_v8 = vsub.s32 %v74_v4, %v76_v5  ;;  %v130_v11 = vsel %vm68_vm3, 1.0, %v188_v3  ;;  %v92_v12 = vadd.f32 %v132_v10, %v131_v9 }
  0x2b   :  { %v78_v13 = vrot.slane %v130_v11, %v77_v8  ;;  %v100_v14 = vrot.slane %v92_v12, %v77_v8 }
  0x2c   :  { %v109_v23 = vld [vmem:[%s257_s2] sm:$0x3] }
  0x2d   :  { %v79_v15 = vcombine.high %v78_v13, %v78_v13  ;;  %v83_v16 = vsel %vm82_vm4, %v78_v13, 0.0  ;;  %v101_v17 = vcombine.high %v100_v14, %v100_v14  ;;  %v104_v19 = vsel %vm82_vm4, %v100_v14, 0.0  ;;  %v113_v26 = vld [vmem:[%s258_s3] sm:$0x3] }
  0x2f   :  { %v84_v18 = vsel %vm82_vm4, %v79_v15, 0.0  ;;  %v105_v21 = vsel %vm82_vm4, %v101_v17, 0.0 }
  0x30   :  { %v85_v20 = vadd.f32 %v84_v18, %v83_v16  ;;  %v106_v22 = vadd.f32 %v105_v21, %v104_v19 }
  0x32   :  { %86 = vadd.xlane.f32.xlu0 %v85_v20 }
  0x36   :  { %107 = vadd.xlane.f32.xlu0 %v106_v22 }
  0xbf   :  { %v87_v24 = vpop.xlane.xlu0 %86 }
  0xc0   :  { %v110_v25 = vadd.f32 %v109_v23, %v87_v24 }
  0xc2   :  { %112 = vst.msk [vmem:[%s257_s2] sm:$0x3] %vm61_vm0, %v110_v25 }
  0xc3   :  { %v108_v27 = vpop.xlane.xlu0 %107 }
  0xc4   :  { %v114_v28 = vadd.f32 %v113_v26, %v108_v27 }
  0xc6   :  { %115 = vst.msk [vmem:[%s258_s3] sm:$0x3] %vm61_vm0, %v114_v28 }
  0xc7   :  { %124 = vsyncpa [#allocation3], 1 }
  0xc8   :  { %125 = vsyncpa [#allocation5], 1 }

</bundles_post_ra>
